<compile_context>
chip_gen: v5e
topology: v5e:2x2
jax: 0.10.0
libtpu: 0.0.40
codegen_flags: <defaults>
</compile_context>

<pallas_src>
import functools

import jax
import jax.numpy as jnp
from jax.experimental import pallas as pl
from jax.experimental.pallas import tpu as pltpu

_LANES = 128
_MAX_TILE_ROWS = 4096          # 4096 * 128 * 4B = 2 MiB per f32 array per tile
_VMEM_LIMIT_BYTES = 40 << 20   # ~9 double-buffered 2 MiB tiles + slack; < v7x 64 MiB physical


def _round_up(a, b):
    return (a + b - 1) // b * b


def _sublane_rows(dtype):
    # Native sublane packing: 8 rows for 32-bit, 16 for 16-bit, 32 for 8-bit dtypes.
    return max(8, 32 // jnp.dtype(dtype).itemsize)


def _choose_tile_rows(rows, granularity):
    tile = min(_MAX_TILE_ROWS, _round_up(rows, granularity))
    if rows >= 2 * granularity:
        # Keep at least 2 row blocks so v7x's two TensorCores both get work on small inputs.
        tile = min(tile, _round_up(pl.cdiv(rows, 2), granularity))
    if tile >= rows:
        tile = rows  # single full-extent block (always a legal block shape)
    return tile


def _basenode_kernel(params_ref, x_ref, mem_in_ref, spike_ref, mem_out_ref, mem_acc):
    """Fused LIF update on one (tile_rows, 128) tile for one timestep.

    grid = (row_tiles [parallel], T [arbitrary]). The membrane potential stays resident in the
    VMEM scratch `mem_acc` across the whole T loop of a tile: loaded from HBM only at t == 0 and
    written back only at t == T-1.

    params_ref:  (3,) f32 in SMEM: [threshold, decay, v_reset]
    x_ref:       (tile_rows, 128) input current for timestep t
    mem_in_ref:  (tile_rows, 128) initial membrane potential for this tile
    spike_ref:   (tile_rows, 128) spike output for timestep t
    mem_out_ref: (tile_rows, 128) final membrane potential (post-reset, after last step)
    mem_acc:     (tile_rows, 128) f32 VMEM scratch holding the running membrane potential
    """
    t = pl.program_id(1)
    thr = params_ref[0]
    decay = params_ref[1]
    v_reset = params_ref[2]

    @pl.when(t == 0)
    def _():
        mem_acc[...] = mem_in_ref[...].astype(jnp.float32)

    # integral: mem += (x - mem) * decay   (f32 in-register; v5e has no bf16 VPU)
    x = x_ref[...].astype(jnp.float32)
    mem = mem_acc[...]
    mem_new = mem + (x - mem) * decay

    # calc_spike: spike = (mem > threshold); hard reset to v_reset where spiked
    fired = mem_new > thr
    spike_ref[...] = fired.astype(spike_ref.dtype)
    mem_acc[...] = jnp.where(fired, v_reset, mem_new)

    @pl.when(t == pl.num_programs(1) - 1)
    def _():
        mem_out_ref[...] = mem_acc[...].astype(mem_out_ref.dtype)


def basenode_step_tiles(x_tiles, mem_tiles, threshold, *, decay=0.2, v_reset=0.0,
                        spike_dtype=None):
    """Fused T-step BaseNode update in tile layout.

    x_tiles:   (T, rows, 128) input currents for T timesteps
    mem_tiles: (rows, 128)    membrane state (carry this between calls; donate under jit so the
                              input_output_aliases update is a true in-place HBM write)
    Returns (spike_tiles (T, rows, 128), new_mem_tiles (rows, 128)).
    """
    T, rows, lanes = x_tiles.shape
    assert lanes == _LANES and mem_tiles.shape == (rows, _LANES)
    if spike_dtype is None:
        spike_dtype = x_tiles.dtype
    spike_dtype = jnp.dtype(spike_dtype)

    gran = max(_sublane_rows(x_tiles.dtype), _sublane_rows(mem_tiles.dtype),
               _sublane_rows(spike_dtype))
    tile_rows = _choose_tile_rows(rows, gran)
    grid = (pl.cdiv(rows, tile_rows), T)

    # Runtime scalars in SMEM (1-D -> ~16 B, no recompile when they change / become learnable).
    params = jnp.stack([
        jnp.asarray(threshold, jnp.float32),
        jnp.asarray(decay, jnp.float32),
        jnp.asarray(v_reset, jnp.float32),
    ])

    return pl.pallas_call(
        _basenode_kernel,
        out_shape=(
            jax.ShapeDtypeStruct((T, rows, _LANES), spike_dtype),
            jax.ShapeDtypeStruct((rows, _LANES), mem_tiles.dtype),
        ),
        grid_spec=pltpu.PrefetchScalarGridSpec(
            num_scalar_prefetch=0,
            grid=grid,
            in_specs=[
                pl.BlockSpec(memory_space=pltpu.MemorySpace.SMEM),
                pl.BlockSpec((None, tile_rows, _LANES), lambda i, t: (t, i, 0)),
                pl.BlockSpec((tile_rows, _LANES), lambda i, t: (i, 0)),
            ],
            out_specs=[
                pl.BlockSpec((None, tile_rows, _LANES), lambda i, t: (t, i, 0)),
                pl.BlockSpec((tile_rows, _LANES), lambda i, t: (i, 0)),
            ],
            scratch_shapes=[pltpu.VMEM((tile_rows, _LANES), jnp.float32)],
        ),
        # mem_tiles (input 2) reuses its HBM buffer for new_mem (output 1).
        input_output_aliases={2: 1},
        compiler_params=pltpu.CompilerParams(
            dimension_semantics=("parallel", "arbitrary"),
            vmem_limit_bytes=_VMEM_LIMIT_BYTES,
        ),
    )(params, x_tiles, mem_tiles)


def _to_tiles(flat):
    total = flat.shape[0]
    rows = pl.cdiv(total, _LANES)
    pad = rows * _LANES - total
    if pad:
        # TODO(synk): for sizes not divisible by 128 this pad costs one extra HBM pass; an
        #             in-kernel lane mask on the ragged tail block would remove it.
        flat = jnp.pad(flat, (0, pad))
    return flat.reshape(rows, _LANES), pad


def basenode_forward(x, mem, threshold, *, decay=0.2, v_reset=0.0, dt=1.0, spike_dtype=None):
    """Single-step BaseNode.forward(x) on any shape. Returns (spike, new_mem) in x's layout."""
    # TODO(synk): dt is stored by the module but unused by its abstract integral(); standard
    #             LIF folds it into `decay`, so it is dropped here.
    del dt
    orig_shape = x.shape
    total = x.size
    if mem is None:  # n_reset(): membrane state starts at rest
        mem = jnp.zeros(orig_shape, x.dtype)

    x2d, pad = _to_tiles(x.reshape(-1))
    mem2d, _ = _to_tiles(mem.reshape(-1).astype(x.dtype))
    spike_t, mem_t = basenode_step_tiles(x2d[None], mem2d, threshold,
                                         decay=decay, v_reset=v_reset,
                                         spike_dtype=spike_dtype)
    spike_flat = spike_t.reshape(-1)
    mem_flat = mem_t.reshape(-1)
    if pad:
        spike_flat = spike_flat[:total]
        mem_flat = mem_flat[:total]
    return spike_flat.reshape(orig_shape), mem_flat.reshape(orig_shape)


if __name__ == "__main__":
    key = jax.random.PRNGKey(0)
    kx, ks = jax.random.split(key)

    # Module __init__ defaults
    threshold, decay, v_reset = 0.5, 0.2, 0.0

    # ---------------- Test 1: single-step forward(), NCHW input (module semantics) -----------
    N, C, H, W = 2, 4, 16, 16
    x = jax.random.normal(kx, (N, C, H, W), dtype=jnp.float32)
    mem0 = jnp.zeros((N, C, H, W), jnp.float32)  # n_reset(): mem starts at None -> zeros

    mem_i = mem0 + (x - mem0) * decay
    spike_exp = (mem_i > threshold).astype(jnp.float32)
    mem_exp = jnp.where(mem_i > threshold, v_reset, mem_i)

    spike, new_mem = basenode_forward(x, mem0, threshold, decay=decay, v_reset=v_reset)
    jax.block_until_ready((spike, new_mem))
    assert spike.shape == (N, C, H, W) and new_mem.shape == (N, C, H, W)
    assert jnp.array_equal(spike, spike_exp), "single-step spike mismatch"
    assert jnp.allclose(new_mem, mem_exp, atol=1e-6), "single-step mem mismatch"

    # ------- Test 2: fused T-step kernel, int8 spikes, tile-layout state, donated mem --------
    T = 4
    N2, C2, H2, W2 = 2, 8, 16, 16  # 4096 elems/step -> 32 rows of 128 lanes (no padding)
    xs = jax.random.normal(ks, (T, N2, C2, H2, W2), dtype=jnp.float32)
    x_tiles = xs.reshape(T, -1, _LANES)
    mem_tiles0 = jnp.zeros((x_tiles.shape[1], _LANES), jnp.float32)

    # pure-JAX reference (computed before the kernel call since mem is donated / aliased)
    m = mem_tiles0
    ref_spikes = []
    for t in range(T):
        m = m + (x_tiles[t] - m) * decay
        fired = m > threshold
        ref_spikes.append(fired)
        m = jnp.where(fired, v_reset, m)
    ref_spikes = jnp.stack(ref_spikes).astype(jnp.int8)
    ref_mem = m

    step_fn = jax.jit(
        functools.partial(basenode_step_tiles, decay=decay, v_reset=v_reset,
                          spike_dtype=jnp.int8),
        donate_argnums=(1,),  # donate mem so input_output_aliases={2:1} is a real in-place update
    )
    spikes_t, mem_t = step_fn(x_tiles, mem_tiles0, threshold)
    jax.block_until_ready((spikes_t, mem_t))
    assert jnp.array_equal(spikes_t, ref_spikes), "multi-step spike mismatch"
    assert jnp.allclose(mem_t, ref_mem, atol=1e-6), "multi-step mem mismatch"

    print("KERNEL_OK")
</pallas_src>

<mosaic_0001>
module attributes {stable_mosaic.version = 11 : i64} {
  func.func @_basenode_kernel(%arg0: i32, %arg1: i32, %arg2: memref<3xf32, #tpu.memory_space<smem>>, %arg3: memref<1x8x128xf32, #tpu.memory_space<vmem>>, %arg4: memref<8x128xf32, #tpu.memory_space<vmem>>, %arg5: memref<1x8x128xf32, #tpu.memory_space<vmem>>, %arg6: memref<8x128xf32, #tpu.memory_space<vmem>>, %arg7: memref<8x128xf32, #tpu.memory_space<vmem>>) attributes {dimension_semantics = [#tpu.dimension_semantics<parallel>, #tpu.dimension_semantics<arbitrary>], iteration_bounds = array<i64: 2, 1>, scalar_prefetch = 0 : i64, scratch_operands = 1 : i64, tpu.core_type = #tpu.core_type<tc>, window_params = [{transform_indices = @transform_0, window_bounds = array<i64: 3>}, {transform_indices = @transform_1, window_bounds = array<i64: 1, 8, 128>}, {transform_indices = @transform_2, window_bounds = array<i64: 8, 128>}, {transform_indices = @transform_3, window_bounds = array<i64: 1, 8, 128>}, {transform_indices = @transform_4, window_bounds = array<i64: 8, 128>}]} {
    %c0 = arith.constant 0 : index
    %0 = memref.load %arg2[%c0] : memref<3xf32, #tpu.memory_space<smem>>
    %c1 = arith.constant 1 : index
    %1 = memref.load %arg2[%c1] : memref<3xf32, #tpu.memory_space<smem>>
    %c2 = arith.constant 2 : index
    %2 = memref.load %arg2[%c2] : memref<3xf32, #tpu.memory_space<smem>>
    %c0_i32 = arith.constant 0 : i32
    %3 = arith.cmpi eq, %arg1, %c0_i32 : i32
    %4 = arith.extui %3 : i1 to i32
    %c0_i32_0 = arith.constant 0 : i32
    %5 = arith.cmpi ne, %4, %c0_i32_0 : i32
    scf.if %5 {
      %c0_13 = arith.constant 0 : index
      %c0_14 = arith.constant 0 : index
      %26 = vector.load %arg4[%c0_13, %c0_14] : memref<8x128xf32, #tpu.memory_space<vmem>>, vector<8x128xf32>
      %c0_15 = arith.constant 0 : index
      %c0_16 = arith.constant 0 : index
      %27 = vector.load %arg7[%c0_15, %c0_16] : memref<8x128xf32, #tpu.memory_space<vmem>>, vector<8x128xf32>
      tpu.vector_store %arg7[%c0_15, %c0_16], %26 {strides = array<i32>} : memref<8x128xf32, #tpu.memory_space<vmem>>, vector<8x128xf32>,
    } else {
    }
    %c0_1 = arith.constant 0 : index
    %c0_2 = arith.constant 0 : index
    %c0_3 = arith.constant 0 : index
    %6 = vector.load %arg3[%c0_1, %c0_2, %c0_3] : memref<1x8x128xf32, #tpu.memory_space<vmem>>, vector<1x8x128xf32>
    %7 = vector.shape_cast %6 : vector<1x8x128xf32> to vector<8x128xf32>
    %c0_4 = arith.constant 0 : index
    %c0_5 = arith.constant 0 : index
    %8 = vector.load %arg7[%c0_4, %c0_5] : memref<8x128xf32, #tpu.memory_space<vmem>>, vector<8x128xf32>
    %9 = arith.subf %7, %8 : vector<8x128xf32>
    %10 = vector.broadcast %1 : f32 to vector<8x128xf32>
    %11 = arith.mulf %9, %10 : vector<8x128xf32>
    %12 = arith.addf %8, %11 : vector<8x128xf32>
    %13 = vector.broadcast %0 : f32 to vector<8x128xf32>
    %14 = arith.cmpf ogt, %12, %13 : vector<8x128xf32>
    %15 = arith.extui %14 : vector<8x128xi1> to vector<8x128xi32>
    %16 = arith.sitofp %15 : vector<8x128xi32> to vector<8x128xf32>
    %c0_6 = arith.constant 0 : index
    %c0_7 = arith.constant 0 : index
    %c0_8 = arith.constant 0 : index
    %17 = vector.load %arg5[%c0_6, %c0_7, %c0_8] : memref<1x8x128xf32, #tpu.memory_space<vmem>>, vector<1x8x128xf32>
    %18 = vector.shape_cast %17 : vector<1x8x128xf32> to vector<8x128xf32>
    %19 = vector.shape_cast %16 : vector<8x128xf32> to vector<1x8x128xf32>
    tpu.vector_store %arg5[%c0_6, %c0_7, %c0_8], %19 {strides = array<i32>} : memref<1x8x128xf32, #tpu.memory_space<vmem>>, vector<1x8x128xf32>,
    %20 = vector.broadcast %2 : f32 to vector<8x128xf32>
    %21 = arith.select %14, %20, %12 : vector<8x128xi1>, vector<8x128xf32>
    %c0_9 = arith.constant 0 : index
    %c0_10 = arith.constant 0 : index
    %22 = vector.load %arg7[%c0_9, %c0_10] : memref<8x128xf32, #tpu.memory_space<vmem>>, vector<8x128xf32>
    tpu.vector_store %arg7[%c0_9, %c0_10], %21 {strides = array<i32>} : memref<8x128xf32, #tpu.memory_space<vmem>>, vector<8x128xf32>,
    %c0_i32_11 = arith.constant 0 : i32
    %23 = arith.cmpi eq, %arg1, %c0_i32_11 : i32
    %24 = arith.extui %23 : i1 to i32
    %c0_i32_12 = arith.constant 0 : i32
    %25 = arith.cmpi ne, %24, %c0_i32_12 : i32
    scf.if %25 {
      %c0_13 = arith.constant 0 : index
      %c0_14 = arith.constant 0 : index
      %26 = vector.load %arg7[%c0_13, %c0_14] : memref<8x128xf32, #tpu.memory_space<vmem>>, vector<8x128xf32>
      %c0_15 = arith.constant 0 : index
      %c0_16 = arith.constant 0 : index
      %27 = vector.load %arg6[%c0_15, %c0_16] : memref<8x128xf32, #tpu.memory_space<vmem>>, vector<8x128xf32>
      tpu.vector_store %arg6[%c0_15, %c0_16], %26 {strides = array<i32>} : memref<8x128xf32, #tpu.memory_space<vmem>>, vector<8x128xf32>,
    } else {
    }
    return
  }
  func.func @transform_0(%arg0: i32, %arg1: i32) -> i32 {
    %c0_i32 = arith.constant 0 : i32
    %c0_i32_0 = arith.constant 0 : i32
    return %c0_i32 : i32
  }
  func.func @transform_1(%arg0: i32, %arg1: i32) -> (i32, i32, i32) {
    %c0_i32 = arith.constant 0 : i32
    %c0_i32_0 = arith.constant 0 : i32
    return %arg1, %arg0, %c0_i32 : i32, i32, i32
  }
  func.func @transform_2(%arg0: i32, %arg1: i32) -> (i32, i32) {
    %c0_i32 = arith.constant 0 : i32
    %c0_i32_0 = arith.constant 0 : i32
    return %arg0, %c0_i32 : i32, i32
  }
  func.func @transform_3(%arg0: i32, %arg1: i32) -> (i32, i32, i32) {
    %c0_i32 = arith.constant 0 : i32
    %c0_i32_0 = arith.constant 0 : i32
    return %arg1, %arg0, %c0_i32 : i32, i32, i32
  }
  func.func @transform_4(%arg0: i32, %arg1: i32) -> (i32, i32) {
    %c0_i32 = arith.constant 0 : i32
    %c0_i32_0 = arith.constant 0 : i32
    return %arg0, %c0_i32 : i32, i32
  }
}

</mosaic_0001>

<bundles_post_ra>
// kernel: tpu_custom_call.1
= control target key start
LH: loop header
LB: loop body
LE: loop exit
PB: predicated region body
PF: predicated region fallthrough
CT: control target
= control target key end

     0   :  { %s967_s0 = inlined_call_operand.vmem [shape: f32[3], index: 0, kind: input, shape index: {}]   ;;  %s968_s1 = inlined_call_operand.vmem [shape: f32[1,16,128], index: 1, kind: input, shape index: {}]   ;;  %s969_s2 = inlined_call_operand.hbm [shape: f32[16,128], index: 2, kind: input, shape index: {}, may-alias: {2,4}]   ;;  %s970_s3 = inlined_call_operand.hbm [shape: f32[1,16,128], index: 3, kind: output, shape index: {0}]   ;;  %s971_s4 = inlined_call_operand.hbm [shape: f32[16,128], index: 4, kind: output, shape index: {1}, may-alias: {2,4}]  }
   0x1   :  { %972 = sst [smem:[#allocation15_spill]] %s967_s0 }
   0x2   :  { %973 = sst [smem:[#allocation16_spill]] %s969_s2 }
   0x3   :  { %10 = vsyncpa [#allocation6], 0 }
   0x4   :  { %11 = vsyncpa [#allocation4], 0 }
   0x5   :  { %13 = vsyncpa [#allocation4 + $0x1], 0 }
   0x6   :  { %14 = vsyncpa [#allocation5], 0 }
   0x7   :  { %16 = vsyncpa [#allocation5 + $0x1], 0 }
   0x8   :  { %17 = vsyncpa [#allocation10], 0 }
   0x9   :  { %19 = vsyncpa [#allocation10 + $0x1], 0  ;;  %s786_s15 = smov 0   ;;  %s788_s16 = smov 0  }
   0xa   :  { %s790_s17 = smov 0   ;;  %s792_s18 = smov 0  }
   0xb   :  { %s794_s19 = smov 0   ;;  %s796_s20 = smov 0  }
   0xc LB: > { %s493_s21 = sadd.s32 4294967295, %s757_s20   ;;  %s494_s22 = sadd.s32 4294967294, %s757_s20   ;;  %s757_s20 = sphi %s796_s20, %s25_s20   ;;  %s753_s19 = sphi %s794_s19, %s987_s19   ;;  %s749_s18 = sphi %s792_s18, %s986_s18   ;;  %s745_s17 = sphi %s790_s17, %s985_s17   ;;  %s741_s16 = sphi %s788_s16, %s984_s16   ;;  %s737_s15 = sphi %s786_s15, %s983_s15  }
   0xd   : > { %p106_p0 = scmp.ne.s32.totalorder %s741_s16, %s737_s15  ;;  %p820_p1 = scmp.eq.s32.totalorder %s493_s21, 0 }
   0xe   : > { %p824_p2 = scmp.eq.s32.totalorder %s493_s21, 1  ;;  %p138_p3 = scmp.eq.s32.totalorder %s494_s22, 1 }
   0xf   : > { %p830_p4 = por %p820_p1, %p106_p0  ;;  %p495_p5 = scmp.ge.s32.totalorder %s757_s20, 1 }
  0x10   : > { %p835_p6 = por %p138_p3, %p106_p0  ;;  %p171_p7 = scmp.lt.s32.totalorder %s757_s20, 3 }
  0x11   : > { %s978_s0 = sld [smem:[#allocation15_spill]]  ;;  %s37_s5 = sadd.s32 1, %s753_s19 }
  0x12   : > { %p843_p8 = pnand %p495_p5, %p171_p7  ;;  %s93_s6 = sadd.s32 1, %s745_s17 }
  0x13   : > { %p39_p12 = scmp.ge.s32.totalorder %s37_s5, 2  ;;  %s759_s7 = smov [#allocation3]  }
  0x14   : > { %p525_p10 = pneg %p843_p8  ;;  %p100_p13 = scmp.ne.s32.totalorder %s745_s17, %s741_s16 }
  0x15   : > { %s989_s5 = smov (%p39_p12, %s37_s5), 0  ;;  %p101_p0 = scmp.eq.s32.totalorder %s757_s20, 0 }
  0x16   : > { %p526_p11 = pnand %p525_p10, %p820_p1  ;;  %s90_s8 = ssub.s32 %s753_s19, %s989_s5 }
  0x17   : > { %s183_s29 = sshll.u32 %s978_s0, 4  ;;  %p541_p3 = scmp.lt.s32.totalorder %s757_s20, 2  ;;  %s184_s29 = int_to_ptr.vmem [resolvable:$true] %s183_s29 }
  0x18   : > { %528 = dma.vmem_to_smem (!%p526_p11), %s184_s29, 16, %s759_s7, [#allocation6]  }
  0x19   : > { %p91_p5 = scmp.eq.s32.totalorder %s90_s8, 0  ;;  %p102_p7 = por %p101_p0, %p100_p13 }
  0x1a   : > { %p864_p9 = por %p824_p2, %p100_p13  ;;  %s205_s10 = sand.u32 1, %s745_s17  }
  0x1b   : > { %s870_s11 = scalar_select %p91_p5, %s745_s17, %s93_s6  }
  0x1c   : > { %s498_s12 = sshll.u32 %s205_s10, 3  ;;  %s499_s13 = sshll.u32 %s753_s19, 3 }
  0x1d   : > { %s981_s2 = sld [smem:[#allocation16_spill]]  ;;  %s209_s27 = scalar_lea.vmem [#allocation7], %s498_s12 }
  0x1e   : > { %s217_s28 = sshll.u32 %s209_s27, 4  ;;  %p530_p10 = pnand %p541_p3, %p102_p7  ;;  %s218_s28 = int_to_ptr.vmem [resolvable:$true] %s217_s28 }
  0x1f   : > { %s206_s24 = scalar_lea.sflag [#allocation4], %s205_s10 }
  0x21   : > { %226 = sbr.rel (%p843_p8) target bundleno = 78 (0x4e), region = 32 }
  0x23   : > { %s213_s22 = scalar_lea.hbm %s981_s2, %s499_s13 }
  0x24   : > { %s215_s29 = sshll.u32 %s213_s22, 4  ;;  %s216_s29 = int_to_ptr.hbm [resolvable:$true] %s215_s29 }
  0x25   : > { %532 = dma.hbm_to_vmem [thread:$0]  (!%p530_p10), %s216_s29, 128, %s218_s28, %s206_s24  }
  0x26   : > { %720 = dma.done.wait (%p820_p1), [#allocation6], 16  }
  0x27   : > { %722 = vsyncadd (%p820_p1), [#allocation6], 4294967280  ;;  %s885_s6 = sand.u32 1, %s741_s16  }
  0x28   : > { %s888_s7 = sshll.u32 %s885_s6, 3  ;;  %s234_s8 = scalar_lea.sflag [#allocation4], %s885_s6 }
  0x29   : > { %s237_s10 = scalar_lea.vmem [#allocation7], %s888_s7 }
  0x2a   : > { %724 = dma.done.wait (%p830_p4), %s234_s8, 128  }
  0x2b   : > { %726 = vsyncadd (%p830_p4), %s234_s8, 4294967168 }
  0x2c   : > { %243 = sfence }
  0x2d   : > { %p279_p1 = scmp.lt.s32.totalorder %s749_s18, 1  ;;  %s285_s23 = sld [smem:[#allocation3]]  ;;  %v292_v0 = vld [vmem:[%s237_s10] sm:$0xff]  ;;  %v760_v8 = vmov 0.0  }
  0x2e   : > { %s506_s12 = sld [smem:[#allocation3 + $0x1]]  ;;  %s511_s25 = sshll.u32 %s749_s18, 3 }
  0x2f   : > { %s280_s30 = scalar_select %p279_p1, %s749_s18, 1 }
  0x30   : > { %s507_s27 = sld [smem:[#allocation3 + $0x2]]  ;;  %s331_s24 = scalar_lea.hbm %s970_s3, %s511_s25 }
  0x31   : > { %s505_s13 = sshll.u32 %s280_s30, 3  ;;  %s345_s2 = scalar_lea.hbm %s971_s4, %s511_s25 }
  0x32   : > { %s284_s22 = scalar_lea.vmem %s968_s1, %s505_s13  ;;  %s269_s30 = scalar_lea.vmem [#allocation8], %s888_s7 }
  0x33   : > { %v294_v1 = vld [vmem:[%s284_s22] sm:$0xff]  ;;  %s909_s10 = sshll.u32 %s269_s30, 4  ;;  %v300_v5 = vstv %s285_s23  ;;  %s276_s13 = scalar_lea.vmem [#allocation9], %s888_s7  ;;  %s334_s10 = int_to_ptr.vmem [resolvable:$true] %s909_s10 }
  0x34   : > { %v296_v2 = vsub.f32 %v294_v1, %v292_v0  ;;  %v297_v3 = vstv %s506_s12  ;;  %s912_s14 = sshll.u32 %s276_s13, 4  ;;  %s335_s18 = sshll.u32 %s331_s24, 4  ;;  %s348_s14 = int_to_ptr.vmem [resolvable:$true] %s912_s14  ;;  %s336_s18 = int_to_ptr.hbm [resolvable:$true] %s335_s18 }
  0x35   : > { %s349_s21 = sshll.u32 %s345_s2, 4  ;;  %s314_s0 = scalar_lea.sflag [#allocation5], %s885_s6  ;;  %s916_s21 = int_to_ptr.hbm [resolvable:$true] %s349_s21 }
  0x36   : > { %v298_v4 = vmul.f32 %v297_v3, %v296_v2  ;;  %v305_v7 = vstv %s507_s27  ;;  %s653_s7 = sshra.s32 %s336_s18, 4  ;;  %s659_s22 = scalar_lea.hbm %s970_s3, 16  ;;  %s654_s7 = int_to_ptr.hbm [resolvable:$true] %s653_s7 }
  0x37   : > { %s655_s23 = scalar_lea.hbm %s654_s7, 8  ;;  %p660_p11 = scmp.lt.s32.totalorder %s654_s7, %s970_s3 }
  0x38   : > { %v299_v6 = vadd.f32 %v298_v4, %v292_v0  ;;  %p656_p2 = scmp.ne.s32.totalorder %s654_s7, %s655_s23  ;;  %p661_p12 = scmp.lt.s32.totalorder %s659_s22, %s655_s23 }
  0x3a   : > { %vm301_vm0 = vcmp.gt.f32.partialorder %v299_v6, %v300_v5  ;;  %p657_p4 = pnand %p656_p2, %p864_p9  ;;  %p662_p13 = por %p661_p12, %p660_p11 }
  0x3b   : > { %v508_v9 = vsel %vm301_vm0, 1.0, %v760_v8  ;;  %v306_v10 = vsel %vm301_vm0, %v305_v7, %v299_v6 }
  0x3c   : > { %304 = vst [vmem:[%s269_s30] sm:$0xff] %v508_v9  ;;  %p658_p8 = pneg %p657_p4 }
  0x3d   : > { %312 = vst [vmem:[%s276_s13] sm:$0xff] %v306_v10 }
  0x3e   : > { %p663_p0 = pnand %p662_p13, %p658_p8 }
  0x40   : > { %666 = shalt.err (!%p663_p0)
}
  0x41   : > { %521 = dma.vmem_to_hbm [thread:$0]  (%p864_p9), %s334_s10, 128, %s336_s18, %s314_s0  }
  0x42   : > { %s319_s28 = scalar_lea.sflag [#allocation10], %s885_s6  ;;  %s681_s29 = sshra.s32 %s916_s21, 4  ;;  %s682_s29 = int_to_ptr.hbm [resolvable:$true] %s681_s29 }
  0x43   : > { %s683_s24 = scalar_lea.hbm %s682_s29, 8  ;;  %s687_s13 = scalar_lea.hbm %s971_s4, 16 }
  0x44   : > { %p684_p3 = scmp.ne.s32.totalorder %s682_s29, %s683_s24  ;;  %p688_p10 = scmp.lt.s32.totalorder %s682_s29, %s971_s4 }
  0x45   : > { %p689_p1 = scmp.lt.s32.totalorder %s687_s13, %s683_s24 }
  0x46   : > { %p685_p5 = pnand %p684_p3, %p864_p9 }
  0x47   : > { %p690_p2 = por %p689_p1, %p688_p10 }
  0x48   : > { %p686_p7 = pneg %p685_p5 }
  0x4a   : > { %p691_p4 = pnand %p690_p2, %p686_p7 }
  0x4c   : > { %694 = shalt.err (!%p691_p4)
}
  0x4d   : > { %522 = dma.vmem_to_hbm [thread:$0]  (%p864_p9), %s348_s14, 128, %s916_s21, %s319_s28  }
  0x4e PF: > { %s361_s6 = sand.u32 1, %s737_s15   ;;  %p982_p8 = scmp.ge.s32.totalorder %s757_s20, 2 }
  0x4f   : > { %s362_s10 = scalar_lea.sflag [#allocation5], %s361_s6 }
  0x50   : > { %p534_p11 = pnand %p982_p8, %p835_p6 }
  0x52   : > { %p535_p12 = pneg %p534_p11 }
  0x54   : > { %728 = dma.done.wait (%p535_p12), %s362_s10, 128  }
  0x55   : > { %730 = vsyncadd (%p535_p12), %s362_s10, 4294967168  ;;  %s372_s18 = scalar_lea.sflag [#allocation10], %s361_s6 }
  0x56   : > { %732 = dma.done.wait (%p535_p12), %s372_s18, 128  }
  0x57   : > { %734 = vsyncadd (%p535_p12), %s372_s18, 4294967168  ;;  %s25_s20 = sadd.s32 1, %s757_s20   ;;  %s983_s15 = smov %s741_s16 }
  0x58   : > { %p22_p13 = scmp.ge.s32.totalorder %s25_s20, 4   ;;  %s984_s16 = smov %s745_s17 }
  0x59   : > { %s985_s17 = smov %s870_s11  ;;  %s986_s18 = smov %s753_s19 }
  0x5a   : > { %s987_s19 = smov %s989_s5  ;;  %24 = sbr.rel (!%p22_p13) target bundleno = 12 (0xc), region = 110 }
  0x5f   :  { %378 = vsyncpa [#allocation4], 1 }
  0x60   :  { %380 = vsyncpa [#allocation4 + $0x1], 1 }
  0x61   :  { %381 = vsyncpa [#allocation5], 1 }
  0x62   :  { %383 = vsyncpa [#allocation5 + $0x1], 1 }
  0x63   :  { %384 = vsyncpa [#allocation10], 1 }
  0x64   :  { %386 = vsyncpa [#allocation10 + $0x1], 1 }
  0x65   :  { %387 = vsyncpa [#allocation6], 1 }
  0x66   :  { %389 = vsyncpa [#allocation6 + $0x1], 1 }

</bundles_post_ra>
